<compile_context>
chip_gen: v6e
topology: v6e:2x2x1
jax: 0.10.0
libtpu: 0.0.40
codegen_flags: <defaults>
</compile_context>

<pallas_src>
import functools

import numpy as np
import jax
import jax.numpy as jnp
from jax.experimental import pallas as pl
from jax.experimental.pallas import tpu as pltpu

CFG = dict(
    unified_features_dim=64,   # input feature width
    encoded_input_dim=16,      # encoder output width
)


def _round_up(x, m):
    return ((x + m - 1) // m) * m


# ----------------------------------------------------------------------------
# Pallas kernel: one batch tile of  y = x @ W^T + b
# ----------------------------------------------------------------------------
def encoder_kernel(x_ref, wT_ref, b_ref, o_ref):
    # x_ref : (bb, Din)   current batch tile
    # wT_ref: (Din, Dout) pre-transposed weight (resident across the grid)
    # b_ref : (1, Dout)   bias (resident across the grid)
    o_ref[...] = (
        jnp.dot(x_ref[...], wT_ref[...], preferred_element_type=jnp.float32)
        + b_ref[...]
    )


# ----------------------------------------------------------------------------
# Wrapper
# ----------------------------------------------------------------------------
def encoder_forward_pallas(x, w, b, *, max_block_b=256):
    """x: (B, Din) f32, w: (Dout, Din) f32 (PyTorch layout), b: (Dout,) f32."""
    B, Din = x.shape
    Dout, Din_w = w.shape
    assert Din == Din_w, (Din, Din_w)

    # Host-side layout plumbing (no in-kernel transposes).
    wT = jnp.asarray(w, jnp.float32).T               # (Din, Dout)
    b2 = jnp.asarray(b, jnp.float32).reshape(1, Dout)

    # Pad batch to a sublane multiple and pick a batch tile.
    bb = min(max_block_b, _round_up(B, 8))
    Bp = _round_up(B, bb)
    x_p = jnp.pad(x.astype(jnp.float32), ((0, Bp - B), (0, 0))) if Bp != B else x

    grid = (Bp // bb,)
    y = pl.pallas_call(
        encoder_kernel,
        out_shape=jax.ShapeDtypeStruct((Bp, Dout), jnp.float32),
        grid_spec=pltpu.PrefetchScalarGridSpec(
            num_scalar_prefetch=0,
            grid=grid,
            in_specs=[
                pl.BlockSpec((bb, Din), lambda i: (i, 0)),   # x tile (pipelined)
                pl.BlockSpec((Din, Dout), lambda i: (0, 0)),  # weight (resident)
                pl.BlockSpec((1, Dout), lambda i: (0, 0)),    # bias (resident)
            ],
            out_specs=pl.BlockSpec((bb, Dout), lambda i: (i, 0)),
        ),
        compiler_params=pltpu.CompilerParams(
            dimension_semantics=("parallel",)),   # shard batch tiles across TCs (v7x)
    )(x_p, wT, b2)

    return y[:B]


# ----------------------------------------------------------------------------
# Pure-JAX reference (same math as the PyTorch module)
# ----------------------------------------------------------------------------
def encoder_forward_ref(x, w, b):
    return x @ w.T + b[None, :]


if __name__ == "__main__":
    cfg = CFG
    B = 4
    Din = cfg['unified_features_dim']
    Dout = cfg['encoded_input_dim']

    key = jax.random.PRNGKey(0)
    kx, kw, kb = jax.random.split(key, 3)

    unified_features = jax.random.normal(kx, (B, Din), dtype=jnp.float32)
    weight = (0.1 * jax.random.normal(kw, (Dout, Din))).astype(jnp.float32)
    bias = (0.1 * jax.random.normal(kb, (Dout,))).astype(jnp.float32)

    y = encoder_forward_pallas(unified_features, weight, bias)
    jax.block_until_ready(y)

    y_ref = encoder_forward_ref(unified_features, weight, bias)
    np.testing.assert_allclose(np.asarray(y), np.asarray(y_ref),
                               rtol=1e-5, atol=1e-5)

    print("KERNEL_OK")
</pallas_src>

<mosaic_0001>
module attributes {stable_mosaic.version = 11 : i64} {
  func.func @encoder_kernel(%arg0: i32, %arg1: memref<8x64xf32, #tpu.memory_space<vmem>>, %arg2: memref<64x16xf32, #tpu.memory_space<vmem>>, %arg3: memref<1x16xf32, #tpu.memory_space<vmem>>, %arg4: memref<8x16xf32, #tpu.memory_space<vmem>>) attributes {dimension_semantics = [#tpu.dimension_semantics<parallel>], iteration_bounds = array<i64: 1>, scalar_prefetch = 0 : i64, scratch_operands = 0 : i64, tpu.core_type = #tpu.core_type<tc>, window_params = [{transform_indices = @transform_0, window_bounds = array<i64: 8, 64>}, {pipeline_mode = #tpu.pipeline_mode<synchronous>, transform_indices = @transform_1, window_bounds = array<i64: 64, 16>}, {pipeline_mode = #tpu.pipeline_mode<synchronous>, transform_indices = @transform_2, window_bounds = array<i64: 1, 16>}, {transform_indices = @transform_3, window_bounds = array<i64: 8, 16>}]} {
    %c0 = arith.constant 0 : index
    %c0_0 = arith.constant 0 : index
    %0 = vector.load %arg1[%c0, %c0_0] : memref<8x64xf32, #tpu.memory_space<vmem>>, vector<8x64xf32>
    %c0_1 = arith.constant 0 : index
    %c0_2 = arith.constant 0 : index
    %1 = vector.load %arg2[%c0_1, %c0_2] : memref<64x16xf32, #tpu.memory_space<vmem>>, vector<64x16xf32>
    %cst = arith.constant dense<0.000000e+00> : vector<8x16xf32>
    %2 = tpu.matmul %0, %1, %cst {dimension_numbers = #tpu.dot_dimension_numbers<[1], [0], [0], [1], [0, 0, 1, 1], [], []>} : vector<8x64xf32>, vector<64x16xf32>, vector<8x16xf32> -> vector<8x16xf32>
    %c0_3 = arith.constant 0 : index
    %c0_4 = arith.constant 0 : index
    %3 = vector.load %arg3[%c0_3, %c0_4] : memref<1x16xf32, #tpu.memory_space<vmem>>, vector<1x16xf32>
    %4 = vector.broadcast %3 : vector<1x16xf32> to vector<8x16xf32>
    %5 = arith.addf %2, %4 : vector<8x16xf32>
    %c0_5 = arith.constant 0 : index
    %c0_6 = arith.constant 0 : index
    %6 = vector.load %arg4[%c0_5, %c0_6] : memref<8x16xf32, #tpu.memory_space<vmem>>, vector<8x16xf32>
    tpu.vector_store %arg4[%c0_5, %c0_6], %5 {strides = array<i32>} : memref<8x16xf32, #tpu.memory_space<vmem>>, vector<8x16xf32>,
    return
  }
  func.func @transform_0(%arg0: i32) -> (i32, i32) {
    %c0_i32 = arith.constant 0 : i32
    %c0_i32_0 = arith.constant 0 : i32
    return %arg0, %c0_i32 : i32, i32
  }
  func.func @transform_1(%arg0: i32) -> (i32, i32) {
    %c0_i32 = arith.constant 0 : i32
    %c0_i32_0 = arith.constant 0 : i32
    %c0_i32_1 = arith.constant 0 : i32
    return %c0_i32, %c0_i32_0 : i32, i32
  }
  func.func @transform_2(%arg0: i32) -> (i32, i32) {
    %c0_i32 = arith.constant 0 : i32
    %c0_i32_0 = arith.constant 0 : i32
    %c0_i32_1 = arith.constant 0 : i32
    return %c0_i32, %c0_i32_0 : i32, i32
  }
  func.func @transform_3(%arg0: i32) -> (i32, i32) {
    %c0_i32 = arith.constant 0 : i32
    %c0_i32_0 = arith.constant 0 : i32
    return %arg0, %c0_i32 : i32, i32
  }
}

</mosaic_0001>

<bundles_post_ra>
// kernel: tpu_custom_call.1
= control target key start
LH: loop header
LB: loop body
LE: loop exit
PB: predicated region body
PF: predicated region fallthrough
CT: control target
= control target key end

     0   :  { %v176_v1 = vmov 0.0   ;;  %vm177_vm0 = vmmov 0   ;;  %s232_s0 = inlined_call_operand.vmem [shape: f32[8,64], index: 0, kind: input, shape index: {}]   ;;  %s233_s1 = inlined_call_operand.vmem [shape: f32[64,16], index: 1, kind: input, shape index: {}]   ;;  %s234_s2 = inlined_call_operand.vmem [shape: f32[1,16], index: 2, kind: input, shape index: {}]   ;;  %s235_s3 = inlined_call_operand.hbm [shape: f32[8,16], index: 3, kind: output, shape index: {}]  }
   0x1   :  { %v23_v0 = vld [vmem:[%s233_s1 + $0x38] sm:$0xff]  ;;  %132 = vmatprep.subr.mxu0 %v176_v1  ;;  %v22_v2 = vld [vmem:[%s233_s1 + $0x30] sm:$0xff]  ;;  %148 = vmatprep.mubr.msk.f32.mxu0 %vm177_vm0, %v176_v1  ;;  %v21_v3 = vld [vmem:[%s233_s1 + $0x28] sm:$0xff] }
   0x2   :  { %133 = vmatpush3.msra.mxu0 %v23_v0 }
   0x3   :  { %134 = vmatprep.subr.mxu0 %v176_v1 }
   0x4   :  { %8 = vsyncpa [#allocation3], 0  ;;  %135 = vmatpush3.msra.mxu0 %v22_v2  ;;  %v20_v4 = vld [vmem:[%s233_s1 + $0x20] sm:$0xff]  ;;  %v19_v5 = vld [vmem:[%s233_s1 + $0x18] sm:$0xff]  ;;  %vm31_vm1 = vcmask 523264   ;;  %s178_s5 = smov [#allocation2]  }
   0x5   :  { %136 = vmatprep.subr.mxu0 %v176_v1  ;;  %v18_v6 = vld [vmem:[%s233_s1 + $0x10] sm:$0xff]  ;;  %v17_v7 = vld [vmem:[%s233_s1 + $0x8] sm:$0xff]  ;;  %v16_v8 = vld [vmem:[%s233_s1] sm:$0xff]  ;;  %s113_s6 = sshll.u32 %s178_s5, 4  ;;  %vm105_vm2 = vcmask 130048   ;;  %s114_s6 = int_to_ptr.vmem [resolvable:$true] %s113_s6 }
   0x6   :  { %137 = vmatpush3.msra.mxu0 %v21_v3  ;;  %v15_v9 = vld [vmem:[%s232_s0] sm:$0xff]  ;;  %s154_s1 = scalar_lea.vmem %s114_s6, 128  ;;  %p159_p1 = scmp.lt.s32.totalorder %s114_s6, %s114_s6 }
   0x7   :  { %138 = vmatprep.subr.mxu0 %v176_v1  ;;  %v121_v10 = vld [vmem:[%s234_s2] ss:$0 sm:$0xff]  ;;  %p155_p0 = scmp.ne.s32.totalorder %s114_s6, %s154_s1  ;;  %p160_p2 = scmp.lt.s32.totalorder %s154_s1, %s154_s1 }
   0x8   :  { %139 = vmatpush3.msra.mxu0 %v20_v4 }
   0x9   :  { %140 = vmatprep.subr.mxu0 %v176_v1  ;;  %p161_p3 = por %p160_p2, %p159_p1 }
   0xa   :  { %141 = vmatpush3.msra.mxu0 %v19_v5 }
   0xb   :  { %142 = vmatprep.subr.mxu0 %v176_v1  ;;  %p162_p4 = pnand %p161_p3, %p155_p0 }
   0xc   :  { %143 = vmatpush3.msra.mxu0 %v18_v6 }
   0xd   :  { %144 = vmatprep.subr.mxu0 %v176_v1 }
   0xe   :  { %145 = vmatpush3.msra.mxu0 %v17_v7 }
   0xf   :  { %146 = vmatprep.subr.mxu0 %v176_v1 }
  0x10   :  { %147 = vmatpush3.msra.mxu0 %v16_v8 }
  0x11   :  { %149 = vmatmul.mubr.msk.f32.vlgmr.msra.gmra.mxu0 %vm31_vm1, %v15_v9 }
  0xd1   :  { %v101_v11 = vpop.f32.mrf.mxu0 }
  0xd2   :  { %v102_v12 = vadd.f32 %v121_v10, %v101_v11 }
  0xd3   :  { %v150_v13 = vpop.f32.mrf.mxu0 }
  0xd4   :  { %106 = vst.msk [vmem:[#allocation2] sm:$0xff] %vm105_vm2, %v102_v12 }
  0xd5   :  { %165 = shalt.err (!%p162_p4)
}
  0xd6   :  { %116 = dma.vmem_to_hbm [thread:$0]  %s114_s6, 128, %s235_s3, [#allocation3]  }
  0xd7   :  { %174 = dma.done.wait [#allocation3], 128  }
  0xd8   :  { %175 = vsyncadd [#allocation3], 4294967168 }
  0xd9   :  { %120 = vsyncpa [#allocation3], 1 }

</bundles_post_ra>
